<compile_context>
chip_gen: v7x
topology: tpu7x:2x2x1
jax: 0.10.0
libtpu: 0.0.40
codegen_flags: <defaults>
</compile_context>

<pallas_src>
import jax
import jax.numpy as jnp
import numpy as np
from jax.experimental import pallas as pl
from jax.experimental.pallas import tpu as pltpu


def _pool_sum_kernel(x_ref, sum_ref):
    """Accumulate per-channel spatial sums.

    x_ref:   (C, TILE_S) block (channels on sublanes, spatial on lanes).
    sum_ref: (C, 1) f32 accumulator; same output block for every spatial step,
             so it stays resident in VMEM across the reduction axis.
    """
    s = pl.program_id(1)

    @pl.when(s == 0)
    def _():
        sum_ref[...] = jnp.zeros_like(sum_ref)

    x = x_ref[...].astype(jnp.float32)
    sum_ref[...] += jnp.sum(x, axis=-1, keepdims=True)


def _affine_kernel(x_ref, a_ref, b_ref, o_ref):
    """Streaming per-channel affine: out = a * x + b.

    x_ref/o_ref: (C, TILE_S); a_ref/b_ref: (C, 1) f32 broadcast along lanes.
    """
    x = x_ref[...].astype(jnp.float32)
    o_ref[...] = (a_ref[...] * x + b_ref[...]).astype(o_ref.dtype)


def _pick_tile_s(S, C, itemsize, B, budget_bytes=2 << 20):
    """Largest lane-dense spatial tile (multiple of 128) dividing S that fits a
    per-block VMEM budget (keeps double-buffered in+out well under the 32 MiB
    scoped default on every generation, incl. 64 MiB-VMEM v7x)."""
    if S % 128 != 0:
        return S  # full-extent block (allowed: equals the full array dim)
    max_elems = max(128, budget_bytes // max(1, C * itemsize))
    tile = 128
    t = 256
    while t <= S and t <= max_elems:
        if S % t == 0:
            tile = t
        t *= 2
    # v7x has 2 TensorCores: make sure the parallel grid has >= 2 steps.
    if B * (S // tile) < 2 and tile % 256 == 0:
        tile //= 2
    return tile


def daft_forward(x_img, x_tab, params):
    """DAFT forward: x_img (B, C, D, H, W), x_tab (B, P) -> (B, C, D, H, W)."""
    B, C, D, H, W = x_img.shape
    S = D * H * W
    x3 = x_img.reshape(B, C, S)  # free reshape: no HBM transpose
    itemsize = jnp.dtype(x_img.dtype).itemsize
    tile_s = _pick_tile_s(S, C, itemsize, B)
    n_tiles = S // tile_s

    # ---- Stage 1: per-(batch, channel) spatial sums (Pallas reduction) ----
    pooled_sum = pl.pallas_call(
        _pool_sum_kernel,
        out_shape=jax.ShapeDtypeStruct((B, C, 1), jnp.float32),
        grid=(B, n_tiles),
        in_specs=[
            pl.BlockSpec((pl.Squeezed(), C, tile_s), lambda b, s: (b, 0, s)),
        ],
        out_specs=pl.BlockSpec((pl.Squeezed(), C, 1), lambda b, s: (b, 0, 0)),
        compiler_params=pltpu.CompilerParams(
            dimension_semantics=("parallel", "arbitrary")),
    )(x3)

    # ---- Tiny MLP in the wrapper (off the MXU-padded in-kernel path) ----
    pooled = pooled_sum[:, :, 0] * (1.0 / S)               # (B, C) f32 mean
    w1 = params["w1"].astype(jnp.float32)                  # (C + P, hidden)
    b1 = params["b1"].astype(jnp.float32)
    w2 = params["w2"].astype(jnp.float32)                  # (hidden, 2C)
    b2 = params["b2"].astype(jnp.float32)
    z = jnp.concatenate([pooled, x_tab.astype(jnp.float32)], axis=1)
    h = jnp.maximum(z @ w1 + b1, 0.0)                      # fc1 + ReLU
    y = h @ w2 + b2                                        # fc2
    a = y[:, :C].reshape(B, C, 1)                          # per-channel scale
    b_shift = y[:, C:].reshape(B, C, 1)                    # per-channel shift

    # ---- Stage 2: streaming affine a * x + b (lane-dense, fully parallel) ----
    out = pl.pallas_call(
        _affine_kernel,
        out_shape=jax.ShapeDtypeStruct((B, C, S), x_img.dtype),
        grid=(B, n_tiles),
        in_specs=[
            pl.BlockSpec((pl.Squeezed(), C, tile_s), lambda b, s: (b, 0, s)),
            pl.BlockSpec((pl.Squeezed(), C, 1), lambda b, s: (b, 0, 0)),
            pl.BlockSpec((pl.Squeezed(), C, 1), lambda b, s: (b, 0, 0)),
        ],
        out_specs=pl.BlockSpec((pl.Squeezed(), C, tile_s), lambda b, s: (b, 0, s)),
        compiler_params=pltpu.CompilerParams(
            dimension_semantics=("parallel", "parallel")),
    )(x3, a, b_shift)

    return out.reshape(B, C, D, H, W)


def daft_reference(x_img, x_tab, params):
    """Pure-JAX reference mirroring the PyTorch forward."""
    B, C = x_img.shape[:2]
    pooled = jnp.mean(x_img, axis=(2, 3, 4))               # adaptive_avg_pool3d(1)
    x = jnp.concatenate([pooled, x_tab], axis=1)
    x = jnp.maximum(x @ params["w1"] + params["b1"], 0.0)
    x = x @ params["w2"] + params["b2"]
    a, b = x[:, :C], x[:, C:]                              # tensor_split(x, 2, dim=1)
    a = a[:, :, None, None, None]
    b = b[:, :, None, None, None]
    return a * x_img + b


if __name__ == "__main__":
    # Small shapes consistent with DAFT(P=8, C=4, r=2) on a 3D feature map.
    B, C, D, H, W = 2, 4, 8, 16, 16
    P, r = 8, 2
    hidden = (P + C) // r

    key = jax.random.PRNGKey(0)
    k1, k2, k3, k4, k5, k6 = jax.random.split(key, 6)
    x_img = jax.random.normal(k1, (B, C, D, H, W), dtype=jnp.float32)
    x_tab = jax.random.normal(k2, (B, P), dtype=jnp.float32)
    # Parameters stored in x @ W layout (transpose of PyTorch nn.Linear.weight),
    # with the first C rows of w1 acting on the pooled image features.
    params = {
        "w1": jax.random.normal(k3, (P + C, hidden), dtype=jnp.float32) * 0.1,
        "b1": jax.random.normal(k4, (hidden,), dtype=jnp.float32) * 0.1,
        "w2": jax.random.normal(k5, (hidden, 2 * C), dtype=jnp.float32) * 0.1,
        "b2": jax.random.normal(k6, (2 * C,), dtype=jnp.float32) * 0.1,
    }

    out = jax.block_until_ready(daft_forward(x_img, x_tab, params))
    ref = daft_reference(x_img, x_tab, params)
    np.testing.assert_allclose(np.asarray(out), np.asarray(ref),
                               rtol=1e-5, atol=1e-5)
    print("KERNEL_OK")
</pallas_src>

<mosaic_0001>
module attributes {stable_mosaic.version = 11 : i64} {
  func.func @_pool_sum_kernel(%arg0: i32, %arg1: i32, %arg2: memref<1x4x2048xf32, #tpu.memory_space<vmem>>, %arg3: memref<1x4x1xf32, #tpu.memory_space<vmem>>) attributes {dimension_semantics = [#tpu.dimension_semantics<parallel>, #tpu.dimension_semantics<arbitrary>], iteration_bounds = array<i64: 2, 1>, scalar_prefetch = 0 : i64, scratch_operands = 0 : i64, tpu.core_type = #tpu.core_type<tc>, window_params = [{transform_indices = @transform_0, window_bounds = array<i64: 1, 4, 2048>}, {transform_indices = @transform_1, window_bounds = array<i64: 1, 4, 1>}]} {
    %c0_i32 = arith.constant 0 : i32
    %0 = arith.cmpi eq, %arg1, %c0_i32 : i32
    %1 = arith.extui %0 : i1 to i32
    %c0_i32_0 = arith.constant 0 : i32
    %2 = arith.cmpi ne, %1, %c0_i32_0 : i32
    scf.if %2 {
      %cst_9 = arith.constant 0.000000e+00 : f32
      %13 = vector.broadcast %cst_9 : f32 to vector<4x1xf32>
      %c0_10 = arith.constant 0 : index
      %c0_11 = arith.constant 0 : index
      %c0_12 = arith.constant 0 : index
      %14 = vector.load %arg3[%c0_10, %c0_11, %c0_12] : memref<1x4x1xf32, #tpu.memory_space<vmem>>, vector<1x4x1xf32>
      %15 = vector.shape_cast %14 : vector<1x4x1xf32> to vector<4x1xf32>
      %16 = vector.shape_cast %13 : vector<4x1xf32> to vector<1x4x1xf32>
      tpu.vector_store %arg3[%c0_10, %c0_11, %c0_12], %16 {strides = array<i32>} : memref<1x4x1xf32, #tpu.memory_space<vmem>>, vector<1x4x1xf32>,
    } else {
    }
    %c0 = arith.constant 0 : index
    %c0_1 = arith.constant 0 : index
    %c0_2 = arith.constant 0 : index
    %3 = vector.load %arg2[%c0, %c0_1, %c0_2] : memref<1x4x2048xf32, #tpu.memory_space<vmem>>, vector<1x4x2048xf32>
    %4 = vector.shape_cast %3 : vector<1x4x2048xf32> to vector<4x2048xf32>
    %c0_3 = arith.constant 0 : index
    %c0_4 = arith.constant 0 : index
    %c0_5 = arith.constant 0 : index
    %5 = vector.load %arg3[%c0_3, %c0_4, %c0_5] : memref<1x4x1xf32, #tpu.memory_space<vmem>>, vector<1x4x1xf32>
    %6 = vector.shape_cast %5 : vector<1x4x1xf32> to vector<4x1xf32>
    %cst = arith.constant dense<0.000000e+00> : vector<4xf32>
    %7 = vector.multi_reduction <add>, %4, %cst [1] : vector<4x2048xf32> to vector<4xf32>
    %8 = vector.shape_cast %7 : vector<4xf32> to vector<4x1xf32>
    %9 = arith.addf %6, %8 : vector<4x1xf32>
    %c0_6 = arith.constant 0 : index
    %c0_7 = arith.constant 0 : index
    %c0_8 = arith.constant 0 : index
    %10 = vector.load %arg3[%c0_6, %c0_7, %c0_8] : memref<1x4x1xf32, #tpu.memory_space<vmem>>, vector<1x4x1xf32>
    %11 = vector.shape_cast %10 : vector<1x4x1xf32> to vector<4x1xf32>
    %12 = vector.shape_cast %9 : vector<4x1xf32> to vector<1x4x1xf32>
    tpu.vector_store %arg3[%c0_6, %c0_7, %c0_8], %12 {strides = array<i32>} : memref<1x4x1xf32, #tpu.memory_space<vmem>>, vector<1x4x1xf32>,
    return
  }
  func.func @transform_0(%arg0: i32, %arg1: i32) -> (i32, i32, i32) {
    %c0_i32 = arith.constant 0 : i32
    %c0_i32_0 = arith.constant 0 : i32
    return %arg0, %c0_i32, %arg1 : i32, i32, i32
  }
  func.func @transform_1(%arg0: i32, %arg1: i32) -> (i32, i32, i32) {
    %c0_i32 = arith.constant 0 : i32
    %c0_i32_0 = arith.constant 0 : i32
    %c0_i32_1 = arith.constant 0 : i32
    return %arg0, %c0_i32, %c0_i32_0 : i32, i32, i32
  }
}

</mosaic_0001>

<bundles_post_ra>
// kernel: tpu_custom_call.1
= control target key start
LH: loop header
LB: loop body
LE: loop exit
PB: predicated region body
PF: predicated region fallthrough
CT: control target
= control target key end

     0   :  { %6 = vsyncpa [#allocation3], 0  ;;  %s631_s0 = inlined_call_operand.hbm [shape: f32[2,4,2048], index: 0, kind: input, shape index: {}]   ;;  %s632_s1 = inlined_call_operand.vmem [shape: f32[2,4,1], index: 1, kind: output, shape index: {}]  }
   0x1   :  { %8 = vsyncpa [#allocation3 + $0x1], 0  ;;  %s473_s6 = smov 0   ;;  %s475_s7 = smov 0  }
   0x2   :  { %s477_s8 = smov 0   ;;  %s479_s9 = smov 0  }
   0x3   :  { %s481_s10 = smov 0   ;;  %s483_s11 = smov 0  }
   0x4 LB: > { %s302_s12 = sadd.s32 4294967295, %s459_s11   ;;  %s26_s13 = sadd.s32 1, %s455_s10  ;;  %s459_s11 = sphi %s483_s11, %s14_s11   ;;  %s455_s10 = sphi %s481_s10, %s642_s10   ;;  %s451_s9 = sphi %s479_s9, %s641_s9   ;;  %s447_s8 = sphi %s477_s8, %s640_s8   ;;  %s443_s7 = sphi %s475_s7, %s639_s7   ;;  %s439_s6 = sphi %s473_s6, %s638_s6  }
   0x5   : > { %p28_p0 = scmp.ge.s32.totalorder %s26_s13, 2  ;;  %s35_s14 = sadd.s32 1, %s447_s8 }
   0x6   : > { %p42_p1 = scmp.ne.s32.totalorder %s447_s8, %s443_s7  ;;  %p43_p2 = scmp.eq.s32.totalorder %s459_s11, 0 }
   0x7   : > { %s644_s13 = smov (%p28_p0, %s26_s13), 0  ;;  %p48_p4 = scmp.ne.s32.totalorder %s443_s7, %s439_s6 }
   0x8   : > { %p509_p3 = por %p43_p2, %p42_p1  ;;  %s30_s16 = ssub.s32 %s455_s10, %s644_s13 }
   0x9   : > { %p49_p5 = scmp.eq.s32.totalorder %s302_s12, 0  ;;  %p33_p6 = scmp.eq.s32.totalorder %s30_s16, 0 }
   0xa   : > { %p321_p8 = scmp.lt.s32.totalorder %s459_s11, 2  ;;  %s98_s19 = sand.u32 1, %s447_s8  }
   0xb   : > { %p516_p7 = por %p49_p5, %p48_p4  ;;  %s314_s20 = sshll.u32 %s455_s10, 10 }
   0xc   : > { %s522_s18 = scalar_select %p33_p6, %s447_s8, %s35_s14  }
   0xd   : > { %s306_s21 = sshll.u32 %s98_s19, 6  ;;  %s529_s24 = scalar_lea.hbm %s631_s0, %s314_s20 }
   0xe   : > { %s102_s25 = scalar_lea.vmem [#allocation2], %s306_s21  ;;  %p533_p9 = pnand %p321_p8, %p509_p3 }
   0xf   : > { %s112_s26 = sshll.u32 %s102_s25, 4  ;;  %s99_s28 = scalar_lea.sflag [#allocation3], %s98_s19  ;;  %s537_s26 = int_to_ptr.vmem [resolvable:$true] %s112_s26 }
  0x10   : > { %s379_s29 = scalar_lea.hbm %s529_s24, 1024  ;;  %p381_p13 = pneg %p533_p9 }
  0x11   : > { %p380_p12 = scmp.ne.s32.totalorder %s529_s24, %s379_s29  ;;  %s384_s3 = scalar_lea.hbm %s631_s0, 2048 }
  0x12   : > { %p385_p2 = scmp.lt.u32.totalorder %s529_s24, %s631_s0  ;;  %p386_p3 = scmp.lt.u32.totalorder %s384_s3, %s379_s29 }
  0x13   : > { %p382_p0 = pnand %p381_p13, %p380_p12  ;;  %p388_p5 = scmp.lt.u32.totalorder %s379_s29, %s529_s24 }
  0x14   : > { %p387_p4 = por %p386_p3, %p385_p2 }
  0x15   : > { %p383_p1 = pneg %p382_p0 }
  0x16   : > { %p389_p6 = por %p388_p5, %p387_p4 }
  0x18   : > { %p390_p8 = pnand %p389_p6, %p383_p1 }
  0x1a   : > { %393 = shalt.err (!%p390_p8)
}
  0x1b   : > { %s394_s6 = scalar_lea.vmem %s537_s26, 1024  ;;  %s461_s12 = smov [#allocation2]  }
  0x1c   : > { %p395_p12 = scmp.ne.s32.totalorder %s537_s26, %s394_s6  ;;  %s399_s14 = sshll.u32 %s461_s12, 4  ;;  %s400_s14 = int_to_ptr.vmem [resolvable:$false] %s399_s14 }
  0x1d   : > { %s401_s15 = scalar_lea.vmem %s400_s14, 2048  ;;  %p402_p11 = scmp.lt.s32.totalorder %s537_s26, %s400_s14 }
  0x1e   : > { %p397_p0 = pnand %p395_p12, %p381_p13  ;;  %p403_p2 = scmp.lt.s32.totalorder %s401_s15, %s394_s6 }
  0x20   : > { %p398_p10 = pneg %p397_p0  ;;  %p404_p3 = por %p403_p2, %p402_p11 }
  0x22   : > { %p405_p4 = pnand %p404_p3, %p398_p10 }
  0x24   : > { %408 = shalt.err (!%p405_p4)
}
  0x25   : > { %320 = dma.hbm_to_vmem [thread:$0]  (!%p533_p9), %s529_s24, 1024, %s537_s26, %s99_s28  }
  0x26   : > { %p636_p1 = scmp.lt.s32.totalorder %s459_s11, 3  ;;  %p637_p5 = scmp.ge.s32.totalorder %s459_s11, 1 }
  0x28   : > { %p118_p13 = pnand %p637_p5, %p636_p1 }
  0x29   : > { %s123_s16 = sand.u32 (!%p118_p13), 1, %s443_s7  }
  0x2a   : > { %121 = sbr.rel (%p118_p13) target bundleno = 229 (0xe5), region = 24  ;;  %s310_s19 = sshll.u32 (!%p118_p13), %s123_s16, 6 }
  0x2b   : > { %s124_s20 = scalar_lea.sflag (!%p118_p13), [#allocation3], %s123_s16  ;;  %s571_s21 = scalar_lea.vmem (!%p118_p13), [#allocation2], %s310_s19 }
  0x31   : > { %434 = dma.done.wait (%p516_p7), %s124_s20, 1024  }
  0x32   : > { %436 = vsyncadd (%p516_p7), %s124_s20, 4294966272  ;;  %p146_p9 = scmp.lt.s32.totalorder %s451_s9, 1  ;;  %vm154_vm0 = vcmask 3072   ;;  %vm189_vm1 = vcmask 1043456   ;;  %v462_v0 = vmov 0.0   ;;  %v156_v1 = vld [vmem:[%s571_s21] sm:$0xff] }
  0x33   : > { %v157_v2 = vld [vmem:[%s571_s21 + $0x8] sm:$0xff]  ;;  %v173_v3 = vcombine.high %v156_v1, %v156_v1  ;;  %v190_v5 = vsel %vm189_vm1, %v156_v1, 0.0  ;;  %v158_v6 = vld [vmem:[%s571_s21 + $0x10] sm:$0xff]  ;;  %v159_v12 = vld [vmem:[%s571_s21 + $0x18] sm:$0xff] }
  0x34   : > { %s646_s9 = smov (!%p146_p9, %s451_s9), 1  ;;  %v174_v4 = vcombine.high %v157_v2, %v157_v2  ;;  %v193_v8 = vsel %vm189_vm1, %v157_v2, 0.0  ;;  %v175_v10 = vcombine.high %v158_v6, %v158_v6  ;;  %v197_v14 = vsel %vm189_vm1, %v158_v6, 0.0  ;;  %v160_v18 = vld [vmem:[%s571_s21 + $0x20] sm:$0xff]  ;;  %v161_v24 = vld [vmem:[%s571_s21 + $0x28] sm:$0xff]  ;;  %v162_v30 = vld [vmem:[%s571_s21 + $0x30] sm:$0xff] }
  0x35   : > { %s311_s22 = sshll.u32 %s646_s9, 2  ;;  %v191_v7 = vsel %vm189_vm1, %v173_v3, 0.0  ;;  %v176_v16 = vcombine.high %v159_v12, %v159_v12  ;;  %v201_v20 = vsel %vm189_vm1, %v159_v12, 0.0  ;;  %v177_v22 = vcombine.high %v160_v18, %v160_v18  ;;  %v163_v36 = vld [vmem:[%s571_s21 + $0x38] sm:$0xff] }
  0x36   : > { %s582_s25 = scalar_lea.vmem %s632_s1, %s311_s22  ;;  %v192_v9 = vadd.f32 %v191_v7, %v190_v5  ;;  %v195_v11 = vsel %vm189_vm1, %v174_v4, 0.0  ;;  %v199_v17 = vsel %vm189_vm1, %v175_v10, 0.0  ;;  %v205_v26 = vsel %vm189_vm1, %v160_v18, 0.0 }
  0x37   : > { %155 = vst.msk [vmem:[%s582_s25] sm:$0xf] %vm154_vm0, %v462_v0  ;;  %v203_v23 = vsel %vm189_vm1, %v176_v16, 0.0  ;;  %v178_v28 = vcombine.high %v161_v24, %v161_v24  ;;  %v207_v29 = vsel %vm189_vm1, %v177_v22, 0.0  ;;  %v209_v32 = vsel %vm189_vm1, %v161_v24, 0.0 }
  0x38   : > { %v194_v13 = vadd.f32 %v193_v8, %v192_v9  ;;  %v179_v34 = vcombine.high %v162_v30, %v162_v30  ;;  %v213_v38 = vsel %vm189_vm1, %v162_v30, 0.0  ;;  %v180_v40 = vcombine.high %v163_v36, %v163_v36 }
  0x39   : > { %v211_v35 = vsel %vm189_vm1, %v178_v28, 0.0  ;;  %v217_v43 = vsel %vm189_vm1, %v163_v36, 0.0 }
  0x3a   : > { %v196_v15 = vadd.f32 %v195_v11, %v194_v13  ;;  %v215_v41 = vsel %vm189_vm1, %v179_v34, 0.0  ;;  %v219_v45 = vsel %vm189_vm1, %v180_v40, 0.0 }
  0x3c   : > { %v198_v19 = vadd.f32 %v197_v14, %v196_v15 }
  0x3e   : > { %v200_v21 = vadd.f32 %v199_v17, %v198_v19  ;;  %v164_v48 = vld [vmem:[%s582_s25] sm:$0xf] }
  0x40   : > { %v202_v25 = vadd.f32 %v201_v20, %v200_v21 }
  0x42   : > { %v204_v27 = vadd.f32 %v203_v23, %v202_v25 }
  0x44   : > { %v206_v31 = vadd.f32 %v205_v26, %v204_v27 }
  0x46   : > { %v208_v33 = vadd.f32 %v207_v29, %v206_v31 }
  0x48   : > { %v210_v37 = vadd.f32 %v209_v32, %v208_v33 }
  0x4a   : > { %v212_v39 = vadd.f32 %v211_v35, %v210_v37 }
  0x4c   : > { %v214_v42 = vadd.f32 %v213_v38, %v212_v39 }
  0x4e   : > { %v216_v44 = vadd.f32 %v215_v41, %v214_v42 }
  0x50   : > { %v218_v46 = vadd.f32 %v217_v43, %v216_v44 }
  0x52   : > { %v220_v47 = vadd.f32 %v219_v45, %v218_v46 }
  0x54   : > { %221 = vadd.xlane.f32.xlu0 %v220_v47 }
  0xe1   : > { %v222_v49 = vpop.xlane.xlu0 %221 }
  0xe2   : > { %v223_v50 = vadd.f32 %v222_v49, %v164_v48 }
  0xe4   : > { %225 = vst.msk [vmem:[%s582_s25] sm:$0xf] %vm154_vm0, %v223_v50 }
  0xe5 PF: > { %s14_s11 = sadd.s32 1, %s459_s11   ;;  %s638_s6 = smov %s443_s7 }
  0xe6   : > { %p11_p7 = scmp.ge.s32.totalorder %s14_s11, 4   ;;  %s639_s7 = smov %s447_s8 }
  0xe7   : > { %s640_s8 = smov %s522_s18  ;;  %s641_s9 = smov %s455_s10 }
  0xe8   : > { %s642_s10 = smov %s644_s13  ;;  %13 = sbr.rel (!%p11_p7) target bundleno = 4 (0x4), region = 68 }
  0xef   :  { %245 = vsyncpa [#allocation3], 1 }
  0xf0   :  { %247 = vsyncpa [#allocation3 + $0x1], 1 }

</bundles_post_ra>
